<compile_context>
chip_gen: v5e
topology: v5e:2x2
jax: 0.10.0
libtpu: 0.0.40
codegen_flags: <defaults>
</compile_context>

<pallas_src>
import functools
import math

import jax
import jax.numpy as jnp
import numpy as np
from jax import lax
from jax.experimental import pallas as pl
from jax.experimental.pallas import tpu as pltpu


_LANES = 128
_FOOTPRINT_BUDGET_BYTES = 20 << 20   # pipeline buffers + f32 intermediates per step
_VMEM_LIMIT_BYTES = 40 << 20         # scoped VMEM requested (safe on v5e/v6e/v7x)
_TARGET_GRID_STEPS = 8               # >= 3-4 steps per TensorCore on v7x megacore
_MIN_BLOCK_BYTES = 512 << 10         # don't shrink blocks below a useful DMA size


def make_gaussian_taps(kernel_size: int = 3, sigma: float = 0.5, dim: int = 2):
    """Reproduces GaussianSmoothing.__init__ exactly (dim == 2).

    Returns (taps_h, taps_w, kernel2d):
      taps_h, taps_w : tuples of normalized 1-D taps (Python floats).  The
                       normalized 2-D weight is exactly their outer product,
                       so the separable kernel matches up to f32 rounding.
      kernel2d       : the normalized 2-D weight (for reference checking).
    """
    assert dim == 2, "this kernel implements the dim=2 (spatial) case"
    sizes = [kernel_size] * dim
    stds = [sigma] * dim
    factors = []
    for size, std in zip(sizes, stds):
        mean = (size - 1) / 2.0
        g = [1.0 / (std * math.sqrt(2.0 * math.pi))
             * math.exp(-(((i - mean) / (2.0 * std)) ** 2)) for i in range(size)]
        factors.append(g)
    taps_h = tuple(float(v) / float(sum(factors[0])) for v in factors[0])
    taps_w = tuple(float(v) / float(sum(factors[1])) for v in factors[1])
    k2d = np.outer(np.asarray(factors[0]), np.asarray(factors[1]))
    k2d = k2d / k2d.sum()
    return taps_h, taps_w, jnp.asarray(k2d, dtype=jnp.float32)


def _smooth_kernel_plane_first(x_ref, o_ref, *, taps_h, taps_w):
    """x_ref: (BP, H, W), o_ref: (BP, Ho, Wo).  H on sublanes, W on lanes."""
    KH, KW = len(taps_h), len(taps_w)
    _, H, W = x_ref.shape
    Ho, Wo = H - KH + 1, W - KW + 1
    # Vertical (sublane) pass: each tap is an offset VMEM load of the ref.
    tmp = taps_h[0] * x_ref[:, 0:Ho, :].astype(jnp.float32)
    for i in range(1, KH):
        tmp = tmp + taps_h[i] * x_ref[:, i:i + Ho, :].astype(jnp.float32)
    # Horizontal (lane) pass on the f32 value.
    acc = taps_w[0] * tmp[:, :, 0:Wo]
    for j in range(1, KW):
        acc = acc + taps_w[j] * tmp[:, :, j:j + Wo]
    o_ref[...] = acc.astype(o_ref.dtype)


def _smooth_kernel_plane_last(x_ref, o_ref, *, taps_h, taps_w):
    """x_ref: (H, W, BP), o_ref: (Ho, Wo, BP).  Fused plane axis on lanes."""
    KH, KW = len(taps_h), len(taps_w)
    H, W, _ = x_ref.shape
    Ho, Wo = H - KH + 1, W - KW + 1
    # Vertical pass: leading-dim address offsets (plain offset vlds), lanes dense.
    tmp = taps_h[0] * x_ref[0:Ho, :, :].astype(jnp.float32)
    for i in range(1, KH):
        tmp = tmp + taps_h[i] * x_ref[i:i + Ho, :, :].astype(jnp.float32)
    # Horizontal pass: sublane (XLU) shifts of the f32 value.
    acc = taps_w[0] * tmp[:, 0:Wo, :]
    for j in range(1, KW):
        acc = acc + taps_w[j] * tmp[:, j:j + Wo, :]
    o_ref[...] = acc.astype(o_ref.dtype)


def _footprint_bytes(bp, H, W, Ho, Wo, io_itemsize):
    """Honest per-step VMEM footprint: double-buffered in/out pipeline blocks
    plus the f32 intermediates (tmp + acc) materialized by the kernel."""
    pipeline = 2 * bp * (H * W + Ho * Wo) * io_itemsize
    intermediates = bp * (Ho * W + Ho * Wo) * 4
    return pipeline + intermediates


def _choose_block_planes(P, H, W, Ho, Wo, io_itemsize, granularity=1):
    """How many fused (N*C) planes to process per grid step.

    Largest multiple of `granularity` whose footprint fits the VMEM budget,
    preferring >= _TARGET_GRID_STEPS steps (DMA/compute overlap, both v7x
    TensorCores busy) while never shrinking below _MIN_BLOCK_BYTES of input.
    """
    units = -(-P // granularity)
    per_unit = _footprint_bytes(granularity, H, W, Ho, Wo, io_itemsize)
    if per_unit > _FOOTPRINT_BUDGET_BYTES:
        # TODO(synk): add H-halo row tiling for planes too large to fit VMEM
        # (e.g. 2048x2048 f32); fall back to one granule per step for now.
        u = 1
    else:
        u_budget = min(units, _FOOTPRINT_BUDGET_BYTES // per_unit)
        u_steps = max(1, units // _TARGET_GRID_STEPS)
        unit_in_bytes = granularity * H * W * io_itemsize
        u_floor = min(units, -(-_MIN_BLOCK_BYTES // unit_in_bytes))
        u = max(1, min(u_budget, max(u_steps, u_floor)))
    return u * granularity


def gaussian_smoothing(x: jnp.ndarray, taps_h, taps_w) -> jnp.ndarray:
    """Depthwise valid conv (stride 1, no padding); all channels share the
    same separable Gaussian taps.

    x       : (N, C, H, W)
    taps_h  : tuple of KH Python floats (vertical taps)
    taps_w  : tuple of KW Python floats (horizontal taps)
    returns : (N, C, H-KH+1, W-KW+1), same dtype as x
    """
    N, C, H, W = x.shape
    KH, KW = len(taps_h), len(taps_w)
    Ho, Wo = H - KH + 1, W - KW + 1
    P = N * C                                     # fuse batch and channel axes
    itemsize = jnp.dtype(x.dtype).itemsize

    flops = P * (Ho * W * (2 * KH - 1) + Ho * Wo * (2 * KW - 1))
    bytes_accessed = itemsize * P * (H * W + Ho * Wo)
    cost = pl.CostEstimate(flops=flops, transcendentals=0,
                           bytes_accessed=bytes_accessed)

    # Lane-density heuristic: with small W most of every vreg and every store
    # is wasted in (P, H, W) layout; if the fused plane axis can fill the 128
    # lanes, go plane-last (the wrapper transpose is plain XLA layout plumbing).
    plane_last = (W < _LANES) and (P >= _LANES) and (P % _LANES == 0)

    if plane_last:
        xk = jnp.transpose(x.reshape(P, H, W), (1, 2, 0))        # (H, W, P)
        BP = _choose_block_planes(P, H, W, Ho, Wo, itemsize, granularity=_LANES)
        grid = (pl.cdiv(P, BP),)
        kernel = functools.partial(_smooth_kernel_plane_last,
                                   taps_h=taps_h, taps_w=taps_w)
        in_specs = [pl.BlockSpec((H, W, BP), lambda p: (0, 0, p))]
        out_specs = pl.BlockSpec((Ho, Wo, BP), lambda p: (0, 0, p))
        out_shape = jax.ShapeDtypeStruct((Ho, Wo, P), x.dtype)
    else:
        xk = x.reshape(P, H, W)
        BP = _choose_block_planes(P, H, W, Ho, Wo, itemsize, granularity=1)
        grid = (pl.cdiv(P, BP),)
        kernel = functools.partial(_smooth_kernel_plane_first,
                                   taps_h=taps_h, taps_w=taps_w)
        in_specs = [pl.BlockSpec((BP, H, W), lambda p: (p, 0, 0))]
        out_specs = pl.BlockSpec((BP, Ho, Wo), lambda p: (p, 0, 0))
        out_shape = jax.ShapeDtypeStruct((P, Ho, Wo), x.dtype)

    vmem_limit = int(max(_VMEM_LIMIT_BYTES,
                         _footprint_bytes(BP, H, W, Ho, Wo, itemsize) + (8 << 20)))

    out = pl.pallas_call(
        kernel,
        out_shape=out_shape,
        grid=grid,
        in_specs=in_specs,
        out_specs=out_specs,
        compiler_params=pltpu.CompilerParams(
            dimension_semantics=("parallel",),
            vmem_limit_bytes=vmem_limit),
        cost_estimate=cost,
    )(xk)

    if plane_last:
        out = jnp.transpose(out, (2, 0, 1))
    return out.reshape(N, C, Ho, Wo)


def _reference(x, weight2d):
    # Pure-JAX depthwise conv reference (groups = channels, valid padding).
    C = x.shape[1]
    w = jnp.broadcast_to(weight2d, (C,) + weight2d.shape)[:, None, :, :]  # (C,1,KH,KW)
    return lax.conv_general_dilated(
        x, w, window_strides=(1, 1), padding="VALID",
        dimension_numbers=("NCHW", "OIHW", "NCHW"),
        feature_group_count=C)


if __name__ == "__main__":
    taps_h, taps_w, w2d = make_gaussian_taps(kernel_size=3, sigma=0.5, dim=2)

    # Small shape from the module spec (exercises the plane-first path).
    key = jax.random.PRNGKey(0)
    N, C, H, W = 2, 4, 16, 16
    x = jax.random.normal(key, (N, C, H, W), dtype=jnp.float32)
    out = jax.block_until_ready(gaussian_smoothing(x, taps_h, taps_w))
    ref = jax.block_until_ready(_reference(x, w2d))
    assert out.shape == (N, C, H - 2, W - 2)
    assert jnp.allclose(out, ref, atol=1e-5, rtol=1e-5)

    # Wider-channel shape (exercises the lane-dense plane-last path).
    key2 = jax.random.PRNGKey(0)
    N2, C2 = 2, 64
    x2 = jax.random.normal(key2, (N2, C2, H, W), dtype=jnp.float32)
    out2 = jax.block_until_ready(gaussian_smoothing(x2, taps_h, taps_w))
    ref2 = jax.block_until_ready(_reference(x2, w2d))
    assert out2.shape == (N2, C2, H - 2, W - 2)
    assert jnp.allclose(out2, ref2, atol=1e-5, rtol=1e-5)

    print("KERNEL_OK")
</pallas_src>

<mosaic_0001>
module attributes {stable_mosaic.version = 11 : i64} {
  func.func @_smooth_kernel_plane_first(%arg0: i32, %arg1: memref<8x16x16xf32, #tpu.memory_space<vmem>>, %arg2: memref<8x14x14xf32, #tpu.memory_space<vmem>>) attributes {dimension_semantics = [#tpu.dimension_semantics<parallel>], iteration_bounds = array<i64: 1>, scalar_prefetch = 0 : i64, scratch_operands = 0 : i64, tpu.core_type = #tpu.core_type<tc>, window_params = [{transform_indices = @transform_0, window_bounds = array<i64: 8, 16, 16>}, {transform_indices = @transform_1, window_bounds = array<i64: 8, 14, 14>}]} {
    %c0 = arith.constant 0 : index
    %c0_0 = arith.constant 0 : index
    %c0_1 = arith.constant 0 : index
    %0 = vector.load %arg1[%c0, %c0_0, %c0_1] : memref<8x16x16xf32, #tpu.memory_space<vmem>>, vector<8x14x16xf32>
    %cst = arith.constant 0.211941555 : f32
    %1 = vector.broadcast %cst : f32 to vector<8x14x16xf32>
    %2 = arith.mulf %1, %0 : vector<8x14x16xf32>
    %c0_2 = arith.constant 0 : index
    %c1 = arith.constant 1 : index
    %c0_3 = arith.constant 0 : index
    %3 = vector.load %arg1[%c0_2, %c1, %c0_3] : memref<8x16x16xf32, #tpu.memory_space<vmem>>, vector<8x14x16xf32>
    %cst_4 = arith.constant 0.57611686 : f32
    %4 = vector.broadcast %cst_4 : f32 to vector<8x14x16xf32>
    %5 = arith.mulf %4, %3 : vector<8x14x16xf32>
    %6 = arith.addf %2, %5 : vector<8x14x16xf32>
    %c0_5 = arith.constant 0 : index
    %c2 = arith.constant 2 : index
    %c0_6 = arith.constant 0 : index
    %7 = vector.load %arg1[%c0_5, %c2, %c0_6] : memref<8x16x16xf32, #tpu.memory_space<vmem>>, vector<8x14x16xf32>
    %cst_7 = arith.constant 0.211941555 : f32
    %8 = vector.broadcast %cst_7 : f32 to vector<8x14x16xf32>
    %9 = arith.mulf %8, %7 : vector<8x14x16xf32>
    %10 = arith.addf %6, %9 : vector<8x14x16xf32>
    %11 = vector.extract_strided_slice %10 {offsets = [0, 0, 0], sizes = [8, 14, 14], strides = [1, 1, 1]} : vector<8x14x16xf32> to vector<8x14x14xf32>
    %cst_8 = arith.constant 0.211941555 : f32
    %12 = vector.broadcast %cst_8 : f32 to vector<8x14x14xf32>
    %13 = arith.mulf %12, %11 : vector<8x14x14xf32>
    %14 = vector.extract_strided_slice %10 {offsets = [0, 0, 1], sizes = [8, 14, 14], strides = [1, 1, 1]} : vector<8x14x16xf32> to vector<8x14x14xf32>
    %cst_9 = arith.constant 0.57611686 : f32
    %15 = vector.broadcast %cst_9 : f32 to vector<8x14x14xf32>
    %16 = arith.mulf %15, %14 : vector<8x14x14xf32>
    %17 = arith.addf %13, %16 : vector<8x14x14xf32>
    %18 = vector.extract_strided_slice %10 {offsets = [0, 0, 2], sizes = [8, 14, 14], strides = [1, 1, 1]} : vector<8x14x16xf32> to vector<8x14x14xf32>
    %cst_10 = arith.constant 0.211941555 : f32
    %19 = vector.broadcast %cst_10 : f32 to vector<8x14x14xf32>
    %20 = arith.mulf %19, %18 : vector<8x14x14xf32>
    %21 = arith.addf %17, %20 : vector<8x14x14xf32>
    %c0_11 = arith.constant 0 : index
    %c0_12 = arith.constant 0 : index
    %c0_13 = arith.constant 0 : index
    %22 = vector.load %arg2[%c0_11, %c0_12, %c0_13] : memref<8x14x14xf32, #tpu.memory_space<vmem>>, vector<8x14x14xf32>
    tpu.vector_store %arg2[%c0_11, %c0_12, %c0_13], %21 {strides = array<i32>} : memref<8x14x14xf32, #tpu.memory_space<vmem>>, vector<8x14x14xf32>,
    return
  }
  func.func @transform_0(%arg0: i32) -> (i32, i32, i32) {
    %c0_i32 = arith.constant 0 : i32
    %c0_i32_0 = arith.constant 0 : i32
    %c0_i32_1 = arith.constant 0 : i32
    return %arg0, %c0_i32, %c0_i32_0 : i32, i32, i32
  }
  func.func @transform_1(%arg0: i32) -> (i32, i32, i32) {
    %c0_i32 = arith.constant 0 : i32
    %c0_i32_0 = arith.constant 0 : i32
    %c0_i32_1 = arith.constant 0 : i32
    return %arg0, %c0_i32, %c0_i32_0 : i32, i32, i32
  }
}

</mosaic_0001>

<bundles_post_ra>
// kernel: tpu_custom_call.1
= control target key start
LH: loop header
LB: loop body
LE: loop exit
PB: predicated region body
PF: predicated region fallthrough
CT: control target
= control target key end

     0   :  { %6 = vsyncpa [#allocation3], 0  ;;  %s398_s9 = smov [#allocation2]   ;;  %s399_s11 = smov 128   ;;  %s586_s0 = inlined_call_operand.hbm [shape: f32[8,16,16], index: 0, kind: input, shape index: {}]   ;;  %s587_s1 = inlined_call_operand.vmem [shape: f32[8,14,14], index: 1, kind: output, shape index: {}]  }
   0x1   :  { %s11_s8 = sshll.u32 %s586_s0, 4  ;;  %s13_s10 = sshll.u32 %s398_s9, 4  ;;  %s12_s8 = int_to_ptr.hbm [resolvable:$true] %s11_s8  ;;  %s14_s10 = int_to_ptr.vmem [resolvable:$true] %s13_s10 }
   0x2   :  { %s400_s12 = smov 8  }
   0x3   :  { %19 = dma.hbm_to_vmem [thread:$0]  %s12_s8, 2048, %s14_s10, [#allocation3], %s399_s11, %s399_s11, %s400_s12  }
   0x4   :  { %396 = dma.done.wait [#allocation3], 2048  }
   0x5   :  { %397 = vsyncadd [#allocation3], 4294965248  ;;  %v28_v0 = vld [vmem:[#allocation2 + $0x20] sm:$0xff]  ;;  %v26_v6 = vld [vmem:[#allocation2 + $0x10] sm:$0xff]  ;;  %s401_s0 = smov 127   ;;  %s402_s13 = smov 126  }
   0x6   :  { %v60_v1 = vld [vmem:[#allocation2 + $0x21] sm:$0xff]  ;;  %v44_v3 = vmul.f32 0.21194156, %v28_v0  ;;  %v58_v7 = vld [vmem:[#allocation2 + $0x11] sm:$0xff]  ;;  %v42_v10 = vmul.f32 0.21194156, %v26_v6 }
   0x7   :  { %v108_v2 = vld [vmem:[#allocation2 + $0x22] sm:$0xff]  ;;  %v76_v4 = vmul.f32 0.57611686, %v60_v1  ;;  %v106_v8 = vld [vmem:[#allocation2 + $0x12] sm:$0xff]  ;;  %v74_v11 = vmul.f32 0.57611686, %v58_v7 }
   0x8   :  { %v124_v5 = vmul.f32 0.21194156, %v108_v2  ;;  %v122_v12 = vmul.f32 0.21194156, %v106_v8  ;;  %v24_v13 = vld [vmem:[#allocation2] sm:$0xff]  ;;  %v30_v57 = vld [vmem:[#allocation2 + $0x30] sm:$0xff] }
   0x9   :  { %v92_v9 = vadd.f32 %v76_v4, %v44_v3  ;;  %v56_v14 = vld [vmem:[#allocation2 + $0x1] sm:$0xff]  ;;  %v90_v17 = vadd.f32 %v74_v11, %v42_v10  ;;  %v40_v18 = vmul.f32 0.21194156, %v24_v13  ;;  %v61_v23 = vld [vmem:[#allocation2 + $0x29] sm:$0x3f]  ;;  %v62_v4 = vld [vmem:[#allocation2 + $0x31] sm:$0xff] }
   0xa   :  { %v104_v15 = vld [vmem:[#allocation2 + $0x2] sm:$0xff]  ;;  %v72_v19 = vmul.f32 0.57611686, %v56_v14  ;;  %v77_v27 = vmul.f32 0.57611686, %v61_v23  ;;  %v114_v23 = vld [vmem:[#allocation2 + $0x52] sm:$0xff] }
   0xb   :  { %v416_v16 = vadd.f32 %v124_v5, %v92_v9  ;;  %v29_v20 = vld [vmem:[#allocation2 + $0x28] sm:$0x3f]  ;;  %v120_v21 = vmul.f32 0.21194156, %v104_v15  ;;  %v419_v25 = vadd.f32 %v122_v12, %v90_v17  ;;  %v27_v30 = vld [vmem:[#allocation2 + $0x18] sm:$0x3f] }
   0xc   :  { %v45_v22 = vmul.f32 0.21194156, %v29_v20  ;;  %v88_v26 = vadd.f32 %v72_v19, %v40_v18  ;;  %v109_v28 = vld [vmem:[#allocation2 + $0x2a] sm:$0x3f]  ;;  %v59_v31 = vld [vmem:[#allocation2 + $0x19] sm:$0x3f] }
   0xd   :  { %v172_v24 = vmul.f32 0.57611686, %v416_v16  ;;  %v125_v29 = vmul.f32 0.21194156, %v109_v28  ;;  %v170_v32 = vmul.f32 0.57611686, %v419_v25 }
   0xe   :  { %v423_v33 = vadd.f32 %v120_v21, %v88_v26  ;;  %v93_v34 = vadd.f32 %v77_v27, %v45_v22  ;;  %v43_v35 = vmul.f32 0.21194156, %v27_v30  ;;  %v107_v36 = vld [vmem:[#allocation2 + $0x1a] sm:$0x3f]  ;;  %v75_v37 = vmul.f32 0.57611686, %v59_v31 }
   0xf   :  { %208 = vrot.lane.b32.xlu2 %v172_v24, %s401_s0  ;;  %v123_v38 = vmul.f32 0.21194156, %v107_v36  ;;  %v25_v39 = vld [vmem:[#allocation2 + $0x8] sm:$0x3f]  ;;  %204 = vrot.lane.b32.xlu1 %v170_v32, %s401_s0  ;;  %v32_v47 = vld [vmem:[#allocation2 + $0x40] sm:$0xff]  ;;  %v110_v5 = vld [vmem:[#allocation2 + $0x32] sm:$0xff] }
  0x10   :  { %v168_v40 = vmul.f32 0.57611686, %v423_v33  ;;  %v427_v41 = vadd.f32 %v125_v29, %v93_v34  ;;  %v41_v42 = vmul.f32 0.21194156, %v25_v39  ;;  %v57_v43 = vld [vmem:[#allocation2 + $0x9] sm:$0x3f]  ;;  %v91_v44 = vadd.f32 %v75_v37, %v43_v35 }
  0x11   :  { %v73_v45 = vmul.f32 0.57611686, %v57_v43  ;;  %v105_v46 = vld [vmem:[#allocation2 + $0xa] sm:$0x3f]  ;;  %v64_v48 = vld [vmem:[#allocation2 + $0x41] sm:$0xff]  ;;  %v34_v21 = vld [vmem:[#allocation2 + $0x50] sm:$0xff] }
  0x12   :  { %200 = vrot.lane.b32.xlu0 %v168_v40, %s401_s0  ;;  %v173_v49 = vmul.f32 0.57611686, %v427_v41  ;;  %v121_v50 = vmul.f32 0.21194156, %v105_v46  ;;  %v48_v51 = vmul.f32 0.21194156, %v32_v47  ;;  %v431_v52 = vadd.f32 %v123_v38, %v91_v44 }
  0x13   :  { %v89_v53 = vadd.f32 %v73_v45, %v41_v42  ;;  %v80_v54 = vmul.f32 0.57611686, %v64_v48  ;;  %v112_v55 = vld [vmem:[#allocation2 + $0x42] sm:$0xff]  ;;  %v31_v56 = vld [vmem:[#allocation2 + $0x38] sm:$0x3f]  ;;  %v38_v42 = vld [vmem:[#allocation2 + $0x70] sm:$0xff] }
  0x14   :  { %v128_v58 = vmul.f32 0.21194156, %v112_v55  ;;  %v47_v59 = vmul.f32 0.21194156, %v31_v56  ;;  %v63_v60 = vld [vmem:[#allocation2 + $0x39] sm:$0x3f] }
  0x15   :  { %v171_v61 = vmul.f32 0.57611686, %v431_v52  ;;  %v434_v62 = vadd.f32 %v121_v50, %v89_v53  ;;  %v96_v63 = vadd.f32 %v80_v54, %v48_v51  ;;  %v79_v0 = vmul.f32 0.57611686, %v63_v60  ;;  %v111_v1 = vld [vmem:[#allocation2 + $0x3a] sm:$0x3f] }
  0x16   :  { %v127_v2 = vmul.f32 0.21194156, %v111_v1  ;;  %v46_v3 = vmul.f32 0.21194156, %v30_v57  ;;  %v78_v9 = vmul.f32 0.57611686, %v62_v4 }
  0x17   :  { %210 = vrot.lane.b32.xlu2 %v173_v49, %s401_s0  ;;  %v169_v6 = vmul.f32 0.57611686, %v434_v62  ;;  %v438_v7 = vadd.f32 %v128_v58, %v96_v63  ;;  %v95_v8 = vadd.f32 %v79_v0, %v47_v59  ;;  %v35_v10 = vld [vmem:[#allocation2 + $0x58] sm:$0x3f]  ;;  %206 = vrot.lane.b32.xlu1 %v171_v61, %s401_s0  ;;  %v126_v11 = vmul.f32 0.21194156, %v110_v5 }
  0x18   :  { %v51_v12 = vmul.f32 0.21194156, %v35_v10  ;;  %v67_v13 = vld [vmem:[#allocation2 + $0x59] sm:$0x3f]  ;;  %v94_v17 = vadd.f32 %v78_v9, %v46_v3  ;;  %v66_v22 = vld [vmem:[#allocation2 + $0x51] sm:$0xff]  ;;  %v36_v59 = vld [vmem:[#allocation2 + $0x60] sm:$0xff] }
  0x19   :  { %v176_v14 = vmul.f32 0.57611686, %v438_v7  ;;  %v442_v15 = vadd.f32 %v127_v2, %v95_v8  ;;  %v83_v18 = vmul.f32 0.57611686, %v67_v13  ;;  %v115_v19 = vld [vmem:[#allocation2 + $0x5a] sm:$0x3f] }
  0x1a   :  { %202 = vrot.lane.b32.xlu0 %v169_v6, %s401_s0  ;;  %v131_v20 = vmul.f32 0.21194156, %v115_v19  ;;  %v446_v26 = vadd.f32 %v126_v11, %v94_v17  ;;  %v50_v28 = vmul.f32 0.21194156, %v34_v21  ;;  %v33_v29 = vld [vmem:[#allocation2 + $0x48] sm:$0x3f] }
  0x1b   :  { %v175_v24 = vmul.f32 0.57611686, %v442_v15  ;;  %v99_v27 = vadd.f32 %v83_v18, %v51_v12  ;;  %v82_v30 = vmul.f32 0.57611686, %v66_v22  ;;  %v130_v31 = vmul.f32 0.21194156, %v114_v23 }
  0x1c   :  { %v49_v32 = vmul.f32 0.21194156, %v33_v29  ;;  %v174_v34 = vmul.f32 0.57611686, %v446_v26  ;;  %v65_v36 = vld [vmem:[#allocation2 + $0x49] sm:$0x3f] }
  0x1d   :  { %v449_v35 = vadd.f32 %v131_v20, %v99_v27  ;;  %v113_v37 = vld [vmem:[#allocation2 + $0x4a] sm:$0x3f]  ;;  %v98_v38 = vadd.f32 %v82_v30, %v50_v28  ;;  %v81_v39 = vmul.f32 0.57611686, %v65_v36  ;;  %v70_v43 = vld [vmem:[#allocation2 + $0x71] sm:$0xff]  ;;  %v68_v60 = vld [vmem:[#allocation2 + $0x61] sm:$0xff] }
  0x1e   :  { %v129_v40 = vmul.f32 0.21194156, %v113_v37  ;;  %v54_v44 = vmul.f32 0.21194156, %v38_v42  ;;  %v86_v45 = vmul.f32 0.57611686, %v70_v43 }
  0x1f   :  { %216 = vrot.lane.b32.xlu2 %v176_v14, %s401_s0  ;;  %214 = vrot.lane.b32.xlu1 %v175_v24, %s401_s0  ;;  %v146_v46 = vadd.f32 %v130_v31, %v98_v38  ;;  %v97_v47 = vadd.f32 %v81_v39, %v49_v32  ;;  %v118_v48 = vld [vmem:[#allocation2 + $0x72] sm:$0xff]  ;;  %v37_v49 = vld [vmem:[#allocation2 + $0x68] sm:$0x3f]  ;;  %v179_v51 = vmul.f32 0.57611686, %v449_v35  ;;  %vm346_vm0 = vcmask 111616  }
  0x20   :  { %v69_v50 = vld [vmem:[#allocation2 + $0x69] sm:$0x3f]  ;;  %v53_v53 = vmul.f32 0.21194156, %v37_v49  ;;  %v102_v56 = vadd.f32 %v86_v45, %v54_v44  ;;  %v134_v57 = vmul.f32 0.21194156, %v118_v48 }
  0x21   :  { %v85_v54 = vmul.f32 0.57611686, %v69_v50  ;;  %v145_v55 = vadd.f32 %v129_v40, %v97_v47  ;;  %v117_v58 = vld [vmem:[#allocation2 + $0x6a] sm:$0x3f]  ;;  %v52_v61 = vmul.f32 0.21194156, %v36_v59 }
  0x22   :  { %212 = vrot.lane.b32.xlu0 %v174_v34, %s401_s0  ;;  %v116_v63 = vld [vmem:[#allocation2 + $0x62] sm:$0xff]  ;;  %v178_v0 = vmul.f32 0.57611686, %v146_v46  ;;  %v133_v2 = vmul.f32 0.21194156, %v117_v58  ;;  %v150_v5 = vadd.f32 %v134_v57, %v102_v56  ;;  %vm344_vm1 = vcmask 113664  }
  0x23   :  { %v101_v1 = vadd.f32 %v85_v54, %v53_v53  ;;  %v84_v3 = vmul.f32 0.57611686, %v68_v60  ;;  %v177_v4 = vmul.f32 0.57611686, %v145_v55  ;;  %v132_v8 = vmul.f32 0.21194156, %v116_v63 }
  0x24   :  { %v39_v9 = vld [vmem:[#allocation2 + $0x78] sm:$0x3f]  ;;  %v182_v12 = vmul.f32 0.57611686, %v150_v5  ;;  %v153_v23 = vmul.f32 0.21194156, %v434_v62 }
  0x25   :  { %v100_v6 = vadd.f32 %v84_v3, %v52_v61  ;;  %v71_v10 = vld [vmem:[#allocation2 + $0x79] sm:$0x3f]  ;;  %v149_v11 = vadd.f32 %v133_v2, %v101_v1  ;;  %v55_v14 = vmul.f32 0.21194156, %v39_v9  ;;  %v463_v27 = vmul.f32 0.21194156, %v423_v33 }
  0x26   :  { %v87_v17 = vmul.f32 0.57611686, %v71_v10  ;;  %v119_v18 = vld [vmem:[#allocation2 + $0x7a] sm:$0x3f]  ;;  %v156_v29 = vmul.f32 0.21194156, %v416_v16 }
  0x27   :  { %222 = vrot.lane.b32.xlu2 %v179_v51, %s401_s0  ;;  %220 = vrot.lane.b32.xlu1 %v178_v0, %s401_s0  ;;  %v148_v13 = vadd.f32 %v132_v8, %v100_v6  ;;  %v181_v19 = vmul.f32 0.57611686, %v149_v11  ;;  %v135_v22 = vmul.f32 0.21194156, %v119_v18  ;;  %v471_v30 = vmul.f32 0.21194156, %v431_v52 }
  0x28   :  { %v103_v21 = vadd.f32 %v87_v17, %v55_v14  ;;  %v475_v62 = vmul.f32 0.21194156, %v419_v25  ;;  %v159_v33 = vmul.f32 0.21194156, %v442_v15  ;;  %v483_v31 = vmul.f32 0.21194156, %v446_v26 }
  0x29   :  { %v180_v20 = vmul.f32 0.57611686, %v148_v13  ;;  %v157_v16 = vmul.f32 0.21194156, %v427_v41  ;;  %v162_v25 = vmul.f32 0.21194156, %v146_v46 }
  0x2a   :  { %218 = vrot.lane.b32.xlu0 %v177_v4, %s401_s0  ;;  %v151_v24 = vadd.f32 %v135_v22, %v103_v21  ;;  %v490_v52 = vmul.f32 0.21194156, %v145_v55  ;;  %v160_v32 = vmul.f32 0.21194156, %v438_v7  ;;  %v165_v15 = vmul.f32 0.21194156, %v149_v11 }
  0x2b   :  { %v497_v26 = vmul.f32 0.21194156, %v148_v13  ;;  %v163_v41 = vmul.f32 0.21194156, %v449_v35  ;;  %v166_v7 = vmul.f32 0.21194156, %v150_v5 }
  0x2c   :  { %v183_v28 = vmul.f32 0.57611686, %v151_v24  ;;  %v504_v34 = vmul.f32 0.21194156, %v151_v24 }
  0x2f   :  { %228 = vrot.lane.b32.xlu2 %v182_v12, %s401_s0  ;;  %226 = vrot.lane.b32.xlu1 %v181_v19, %s401_s0 }
  0x32   :  { %224 = vrot.lane.b32.xlu0 %v180_v20, %s401_s0 }
  0x37   :  { %282 = vrot.lane.b32.xlu2 %v153_v23, %s402_s13  ;;  %280 = vrot.lane.b32.xlu1 %v463_v27, %s402_s13 }
  0x3a   :  { %230 = vrot.lane.b32.xlu0 %v183_v28, %s401_s0 }
  0x3f   :  { %288 = vrot.lane.b32.xlu2 %v156_v29, %s402_s13  ;;  %286 = vrot.lane.b32.xlu1 %v471_v30, %s402_s13 }
  0x42   :  { %284 = vrot.lane.b32.xlu0 %v475_v62, %s402_s13 }
  0x47   :  { %294 = vrot.lane.b32.xlu2 %v159_v33, %s402_s13  ;;  %292 = vrot.lane.b32.xlu1 %v483_v31, %s402_s13 }
  0x4a   :  { %290 = vrot.lane.b32.xlu0 %v157_v16, %s402_s13 }
  0x4f   :  { %300 = vrot.lane.b32.xlu2 %v162_v25, %s402_s13  ;;  %298 = vrot.lane.b32.xlu1 %v490_v52, %s402_s13 }
  0x52   :  { %296 = vrot.lane.b32.xlu0 %v160_v32, %s402_s13 }
  0x57   :  { %306 = vrot.lane.b32.xlu2 %v165_v15, %s402_s13  ;;  %304 = vrot.lane.b32.xlu1 %v497_v26, %s402_s13 }
  0x5a   :  { %302 = vrot.lane.b32.xlu0 %v163_v41, %s402_s13 }
  0x5f   :  { %310 = vrot.lane.b32.xlu1 %v504_v34, %s402_s13 }
  0x62   :  { %308 = vrot.lane.b32.xlu0 %v166_v7, %s402_s13 }
  0x69   :  { %v209_v36 = vpop.permute.xlu2 %208 }
  0x6a   :  { %v252_v55 = vadd.f32 %v209_v36, %v156_v29 }
  0x71   :  { %v211_v37 = vpop.permute.xlu2 %210 }
  0x72   :  { %v253_v38 = vadd.f32 %v211_v37, %v157_v16 }
  0x79   :  { %v217_v39 = vpop.permute.xlu2 %216 }
  0x7a   :  { %v256_v40 = vadd.f32 %v217_v39, %v160_v32 }
  0x81   :  { %v223_v42 = vpop.permute.xlu2 %222  ;;  %v205_v43 = vpop.permute.xlu1 %204 }
  0x82   :  { %v509_v35 = vadd.f32 %v223_v42, %v163_v41  ;;  %v250_v17 = vadd.f32 %v205_v43, %v475_v62 }
  0x84   :  { %v201_v44 = vpop.permute.xlu0 %200 }
  0x85   :  { %v248_v4 = vadd.f32 %v201_v44, %v463_v27 }
  0x89   :  { %v229_v45 = vpop.permute.xlu2 %228  ;;  %v207_v47 = vpop.permute.xlu1 %206 }
  0x8a   :  { %v511_v46 = vadd.f32 %v229_v45, %v166_v7  ;;  %v251_v12 = vadd.f32 %v207_v47, %v471_v30 }
  0x8c   :  { %v203_v48 = vpop.permute.xlu0 %202 }
  0x8d   :  { %v249_v49 = vadd.f32 %v203_v48, %v153_v23 }
  0x91   :  { %v283_v50 = vpop.permute.xlu2 %282  ;;  %v215_v53 = vpop.permute.xlu1 %214 }
  0x92   :  { %v329_v51 = vadd.f32 %v283_v50, %v249_v49  ;;  %v255_v60 = vadd.f32 %v215_v53, %v159_v33 }
  0x94   :  { %347 = vst.msk [vmem:[%s587_s1 + $0x8] sm:$0x3f] %vm346_vm0, %v329_v51  ;;  %v213_v54 = vpop.permute.xlu0 %212 }
  0x95   :  { %v254_v21 = vadd.f32 %v213_v54, %v483_v31 }
  0x99   :  { %v289_v56 = vpop.permute.xlu2 %288  ;;  %v221_v58 = vpop.permute.xlu1 %220 }
  0x9a   :  { %v332_v57 = vadd.f32 %v289_v56, %v252_v55  ;;  %v258_v2 = vadd.f32 %v221_v58, %v162_v25 }
  0x9c   :  { %350 = vst.msk [vmem:[%s587_s1 + $0x20] sm:$0xff] %vm344_vm1, %v332_v57  ;;  %v219_v59 = vpop.permute.xlu0 %218 }
  0x9d   :  { %v257_v28 = vadd.f32 %v219_v59, %v490_v52 }
  0xa1   :  { %v295_v61 = vpop.permute.xlu2 %294  ;;  %v227_v0 = vpop.permute.xlu1 %226 }
  0xa2   :  { %v335_v63 = vadd.f32 %v295_v61, %v255_v60  ;;  %v261_v10 = vadd.f32 %v227_v0, %v165_v15 }
  0xa4   :  { %353 = vst.msk [vmem:[%s587_s1 + $0x38] sm:$0x3f] %vm346_vm0, %v335_v63  ;;  %v225_v1 = vpop.permute.xlu0 %224 }
  0xa5   :  { %v260_v31 = vadd.f32 %v225_v1, %v497_v26 }
  0xa9   :  { %v301_v3 = vpop.permute.xlu2 %300  ;;  %v281_v6 = vpop.permute.xlu1 %280 }
  0xaa   :  { %v338_v5 = vadd.f32 %v301_v3, %v258_v2  ;;  %v328_v8 = vadd.f32 %v281_v6, %v248_v4 }
  0xac   :  { %356 = vst.msk [vmem:[%s587_s1 + $0x50] sm:$0xff] %vm344_vm1, %v338_v5  ;;  %v231_v9 = vpop.permute.xlu0 %230 }
  0xad   :  { %345 = vst.msk [vmem:[%s587_s1] sm:$0xff] %vm344_vm1, %v328_v8  ;;  %v263_v15 = vadd.f32 %v231_v9, %v504_v34 }
  0xb1   :  { %v307_v11 = vpop.permute.xlu2 %306  ;;  %v287_v14 = vpop.permute.xlu1 %286 }
  0xb2   :  { %v341_v13 = vadd.f32 %v307_v11, %v261_v10  ;;  %v331_v18 = vadd.f32 %v287_v14, %v251_v12 }
  0xb4   :  { %359 = vst.msk [vmem:[%s587_s1 + $0x68] sm:$0x3f] %vm346_vm0, %v341_v13  ;;  %v285_v19 = vpop.permute.xlu0 %284 }
  0xb5   :  { %v330_v20 = vadd.f32 %v285_v19, %v250_v17  ;;  %349 = vst.msk [vmem:[%s587_s1 + $0x18] sm:$0x3f] %vm346_vm0, %v331_v18 }
  0xb7   :  { %348 = vst.msk [vmem:[%s587_s1 + $0x10] sm:$0xff] %vm344_vm1, %v330_v20 }
  0xb9   :  { %v293_v22 = vpop.permute.xlu1 %292 }
  0xba   :  { %v334_v23 = vadd.f32 %v293_v22, %v254_v21 }
  0xbc   :  { %v291_v24 = vpop.permute.xlu0 %290  ;;  %352 = vst.msk [vmem:[%s587_s1 + $0x30] sm:$0xff] %vm344_vm1, %v334_v23 }
  0xbd   :  { %v333_v27 = vadd.f32 %v291_v24, %v253_v38 }
  0xbf   :  { %351 = vst.msk [vmem:[%s587_s1 + $0x28] sm:$0x3f] %vm346_vm0, %v333_v27 }
  0xc1   :  { %v299_v29 = vpop.permute.xlu1 %298 }
  0xc2   :  { %v337_v30 = vadd.f32 %v299_v29, %v257_v28 }
  0xc4   :  { %v297_v62 = vpop.permute.xlu0 %296  ;;  %355 = vst.msk [vmem:[%s587_s1 + $0x48] sm:$0x3f] %vm346_vm0, %v337_v30 }
  0xc5   :  { %v336_v33 = vadd.f32 %v297_v62, %v256_v40 }
  0xc7   :  { %354 = vst.msk [vmem:[%s587_s1 + $0x40] sm:$0xff] %vm344_vm1, %v336_v33 }
  0xc9   :  { %v305_v16 = vpop.permute.xlu1 %304 }
  0xca   :  { %v340_v25 = vadd.f32 %v305_v16, %v260_v31 }
  0xcc   :  { %v303_v32 = vpop.permute.xlu0 %302  ;;  %358 = vst.msk [vmem:[%s587_s1 + $0x60] sm:$0xff] %vm344_vm1, %v340_v25 }
  0xcd   :  { %v339_v52 = vadd.f32 %v303_v32, %v509_v35 }
  0xcf   :  { %357 = vst.msk [vmem:[%s587_s1 + $0x58] sm:$0x3f] %vm346_vm0, %v339_v52 }
  0xd1   :  { %v311_v41 = vpop.permute.xlu1 %310 }
  0xd2   :  { %v343_v7 = vadd.f32 %v311_v41, %v263_v15 }
  0xd4   :  { %v309_v26 = vpop.permute.xlu0 %308  ;;  %361 = vst.msk [vmem:[%s587_s1 + $0x78] sm:$0x3f] %vm346_vm0, %v343_v7 }
  0xd5   :  { %v342_v36 = vadd.f32 %v309_v26, %v511_v46 }
  0xd7   :  { %360 = vst.msk [vmem:[%s587_s1 + $0x70] sm:$0xff] %vm344_vm1, %v342_v36 }
  0xd8   :  { %366 = vsyncpa [#allocation3], 1 }

</bundles_post_ra>
